<compile_context>
chip_gen: v5e
topology: v5e:2x2
jax: 0.10.0
libtpu: 0.0.40
codegen_flags: <defaults>
</compile_context>

<pallas_src>
import functools

import jax
import jax.numpy as jnp
from jax.experimental import pallas as pl
from jax.experimental.pallas import tpu as pltpu


def _round_up(a, b):
    return ((a + b - 1) // b) * b


# --------------------------------------------------------------------------
# Hardware queries (generation-aware policy).
# --------------------------------------------------------------------------

_DEFAULT_VMEM = 64 * 1024 * 1024  # conservative fallback (v7x per-TC VMEM)


def _tpu_vmem_bytes():
    try:
        info = pltpu.get_tpu_info()
        cap = getattr(info, "vmem_capacity_bytes", None)
        if cap:
            return int(cap)
    except Exception:
        pass
    return _DEFAULT_VMEM


def _num_tensorcores():
    """Dual-TensorCore chips (megacore v4/v5p, v7x) get a split grid."""
    try:
        kind = jax.devices()[0].device_kind.lower()
    except Exception:
        return 1
    return 2 if any(t in kind for t in ("v4", "v5p", "7x", "v7")) else 1


# --------------------------------------------------------------------------
# Kernel.
# --------------------------------------------------------------------------

def _gru_gate_kernel(x_ref, y_ref, w_ref, ug_ref, b_ref, o_ref, *, mm_dtype):
    D = x_ref.shape[-1]

    x = x_ref[...]
    x_f32 = x.astype(jnp.float32)          # needed in f32 for r*x and the blend

    # LHS = [y | x]: one wide MXU matmul against the stacked (2D, 3D) weight.
    yx = jnp.concatenate(
        [y_ref[...].astype(mm_dtype), x.astype(mm_dtype)], axis=-1)  # (tm, 2D)
    s = (jnp.dot(yx, w_ref[...], preferred_element_type=jnp.float32)
         + b_ref[...])                                               # (tm, 3D) f32

    # sigmoid(t) = 0.5 * (tanh(t/2) + 1): one EUP op per gate element
    # instead of exp + divide.
    r = 0.5 * jnp.tanh(0.5 * s[:, :D]) + 0.5
    z = 0.5 * jnp.tanh(0.5 * s[:, D:2 * D]) + 0.5

    rx = (r * x_f32).astype(mm_dtype)
    h = jnp.tanh(s[:, 2 * D:]
                 + jnp.dot(rx, ug_ref[...], preferred_element_type=jnp.float32))

    o_ref[...] = ((1.0 - z) * x_f32 + z * h).astype(o_ref.dtype)


# --------------------------------------------------------------------------
# One-time weight packing (do this OUTSIDE the per-step call path).
# --------------------------------------------------------------------------

def pack_gru_gate_params(params, *, bg=0.1, mm_dtype=jnp.bfloat16):
    """Transpose, stack y/x weights into one (2D, 3D) matrix, fold biases.

    Column blocks are [r | z | g]; row blocks are [y-side ; x-side] (x-side of
    the g column is zero).  -bg is folded into the z bias; Ug's bias is folded
    into the g bias.
    """
    # TODO(synk): fp8 (v7x) / int8 (v5e, v6e) weight quantization for very
    # large D where even single-buffered bf16 weights press VMEM.
    D = params["Wr_w"].shape[0]
    f32 = jnp.float32
    w_y = jnp.concatenate(
        [params["Wr_w"].T, params["Wz_w"].T, params["Wg_w"].T], axis=1
    ).astype(f32)                                                    # (D, 3D)
    w_x = jnp.concatenate(
        [params["Ur_w"].T, params["Uz_w"].T, jnp.zeros((D, D), f32)], axis=1
    ).astype(f32)                                                    # (D, 3D)
    w_yx = jnp.concatenate([w_y, w_x], axis=0).astype(mm_dtype)      # (2D, 3D)
    u_g = params["Ug_w"].T.astype(mm_dtype)                          # (D, D)
    b = jnp.concatenate(
        [params["Wr_b"] + params["Ur_b"],
         params["Wz_b"] + params["Uz_b"] - bg,
         params["Wg_b"] + params["Ug_b"]], axis=0
    ).astype(f32).reshape(1, 3 * D)                                  # (1, 3D)
    return {"w_yx": w_yx, "u_g": u_g, "b": b}


# --------------------------------------------------------------------------
# Wrapper.
# --------------------------------------------------------------------------

def gru_gate(x, y, packed, *, tm=None):
    """x, y: (batch, seq, dim).  packed: output of pack_gru_gate_params."""
    B, S, D = x.shape
    M = B * S
    mm_dtype = packed["w_yx"].dtype

    vmem_cap = _tpu_vmem_bytes()
    n_tc = _num_tensorcores()

    # Default row tile: big on 128 MiB chips (v5e/v6e), smaller on 64 MiB
    # v7x-class so weights + double-buffered tiles + f32 intermediates fit.
    if tm is None:
        if vmem_cap <= 64 * 1024 * 1024:
            tm = 512 if D <= 512 else (256 if D <= 1536 else 128)
        else:
            tm = 1024 if D <= 512 else (512 if D <= 1536 else 256)

    # Row alignment: 8 sublanes for 4-byte activations, 16 for 2-byte.
    row_align = 16 if jnp.dtype(x.dtype).itemsize == 2 else 8
    if M < row_align:
        tm_eff = M                          # one full-rows block (legal)
    else:
        tm_eff = min(tm, (M // row_align) * row_align)
        tm_eff = max(row_align, (tm_eff // row_align) * row_align)
        if n_tc > 1:
            # Keep >= 2 (and preferably an even number of) grid steps so both
            # TensorCores get work.  Single-TC chips skip this (bigger tiles).
            tm_eff = min(tm_eff, _round_up(pl.cdiv(M, 2), row_align))
            steps = pl.cdiv(M, tm_eff)
            if steps > 1 and steps % 2 == 1:
                tm_eff = min(tm_eff, _round_up(pl.cdiv(M, steps + 1), row_align))
    grid = (pl.cdiv(M, tm_eff),)

    # VMEM budget: single-buffered weights + double-buffered row tiles +
    # in-body f32 intermediates, with margin; capped at ~85% of physical.
    mm_bytes = jnp.dtype(mm_dtype).itemsize
    act_bytes = jnp.dtype(x.dtype).itemsize
    est = (7 * D * D * mm_bytes              # (2D,3D) + (D,D) packed weights
           + 2 * 3 * D * 4                   # bias
           + 2 * 3 * tm_eff * D * act_bytes  # x, y, out tiles (double-buffered)
           + 12 * tm_eff * D * 4)            # [y|x], s, r, z, rx, h, ...
    vmem_limit = int(min(int(0.85 * vmem_cap),
                         max(2 * est, 32 * 1024 * 1024)))

    x2 = x.reshape(M, D)
    y2 = y.reshape(M, D)

    def call(single_buffer_weights):
        # Grid-invariant blocks: constant index_map -> fetched once; single
        # buffering avoids a pointless second resident copy of the weights.
        wkw = ({"pipeline_mode": pl.Buffered(1)}
               if single_buffer_weights else {})
        row_spec = pl.BlockSpec((tm_eff, D), lambda i: (i, 0))
        w_spec = pl.BlockSpec((2 * D, 3 * D), lambda i: (0, 0), **wkw)
        ug_spec = pl.BlockSpec((D, D), lambda i: (0, 0), **wkw)
        b_spec = pl.BlockSpec((1, 3 * D), lambda i: (0, 0), **wkw)
        return pl.pallas_call(
            functools.partial(_gru_gate_kernel, mm_dtype=mm_dtype),
            out_shape=jax.ShapeDtypeStruct((M, D), x.dtype),
            grid_spec=pltpu.PrefetchScalarGridSpec(
                num_scalar_prefetch=0,
                grid=grid,
                in_specs=[row_spec, row_spec,   # x, y row tiles
                          w_spec, ug_spec,      # packed weights
                          b_spec],              # folded bias
                out_specs=row_spec,
            ),
            compiler_params=pltpu.CompilerParams(
                dimension_semantics=("parallel",),
                vmem_limit_bytes=vmem_limit),
        )(x2, y2, packed["w_yx"], packed["u_g"], packed["b"])

    try:
        out = call(True)
    except Exception:
        # jax version without BlockSpec pipeline_mode support: fall back to
        # default (double-buffered) resident weights.
        out = call(False)

    return out.reshape(B, S, D)


# --------------------------------------------------------------------------
# Reference + init (for testing).
# --------------------------------------------------------------------------

def init_gru_gate_params(key, dim, dtype=jnp.float32):
    """Deterministic init mimicking nn.Linear default (uniform +/- 1/sqrt(dim))."""
    bound = 1.0 / jnp.sqrt(jnp.asarray(dim, dtype=jnp.float32))
    names = ["Wr", "Ur", "Wz", "Uz", "Wg", "Ug"]
    params = {}
    keys = jax.random.split(key, 2 * len(names))
    for i, n in enumerate(names):
        params[f"{n}_w"] = jax.random.uniform(
            keys[2 * i], (dim, dim), dtype, minval=-bound, maxval=bound)
        params[f"{n}_b"] = jax.random.uniform(
            keys[2 * i + 1], (dim,), dtype, minval=-bound, maxval=bound)
    return params


def gru_gate_ref(x, y, params, bg=0.1):
    """Pure-JAX reference (matches the PyTorch forward)."""
    def lin(a, w, b):
        return a @ w.T + b
    r = jax.nn.sigmoid(lin(y, params["Wr_w"], params["Wr_b"])
                       + lin(x, params["Ur_w"], params["Ur_b"]))
    z = jax.nn.sigmoid(lin(y, params["Wz_w"], params["Wz_b"])
                       + lin(x, params["Uz_w"], params["Uz_b"]) - bg)
    h = jnp.tanh(lin(y, params["Wg_w"], params["Wg_b"])
                 + lin(r * x, params["Ug_w"], params["Ug_b"]))
    return (1.0 - z) * x + z * h


if __name__ == "__main__":
    key = jax.random.PRNGKey(0)
    kx, ky, kp = jax.random.split(key, 3)

    B, S, D = 2, 8, 128
    x = jax.random.normal(kx, (B, S, D), jnp.float32)
    y = jax.random.normal(ky, (B, S, D), jnp.float32)
    params = init_gru_gate_params(kp, D)
    g_ref = gru_gate_ref(x, y, params, bg=0.1)

    # Near-exact check with f32 matmul operands.
    packed_f32 = pack_gru_gate_params(params, bg=0.1, mm_dtype=jnp.float32)
    g32 = jax.block_until_ready(gru_gate(x, y, packed_f32))
    assert g32.shape == (B, S, D)
    assert jnp.allclose(g32, g_ref, atol=1e-4, rtol=1e-4), \
        f"f32 max err {jnp.max(jnp.abs(g32 - g_ref))}"

    # Fast path: bf16 matmul operands, f32 accumulation + f32 elementwise.
    packed_bf16 = pack_gru_gate_params(params, bg=0.1, mm_dtype=jnp.bfloat16)
    g16 = jax.block_until_ready(gru_gate(x, y, packed_bf16))
    assert jnp.allclose(g16, g_ref, atol=3e-2, rtol=3e-2), \
        f"bf16 max err {jnp.max(jnp.abs(g16 - g_ref))}"

    # Ragged-row case (M not a multiple of the row tile): exercises the
    # masked last tile that replaced the wrapper-side jnp.pad / slice.
    xr, yr = x[:, :7], y[:, :7]
    gr = jax.block_until_ready(gru_gate(xr, yr, packed_f32))
    assert jnp.allclose(gr, g_ref[:, :7], atol=1e-4, rtol=1e-4), \
        f"ragged max err {jnp.max(jnp.abs(gr - g_ref[:, :7]))}"

    print("KERNEL_OK")
</pallas_src>

<mosaic_0001>
module attributes {stable_mosaic.version = 11 : i64} {
  func.func @_gru_gate_kernel(%arg0: i32, %arg1: memref<16x128xf32, #tpu.memory_space<vmem>>, %arg2: memref<16x128xf32, #tpu.memory_space<vmem>>, %arg3: memref<256x384xf32, #tpu.memory_space<vmem>>, %arg4: memref<128x128xf32, #tpu.memory_space<vmem>>, %arg5: memref<1x384xf32, #tpu.memory_space<vmem>>, %arg6: memref<16x128xf32, #tpu.memory_space<vmem>>) attributes {dimension_semantics = [#tpu.dimension_semantics<parallel>], iteration_bounds = array<i64: 1>, scalar_prefetch = 0 : i64, scratch_operands = 0 : i64, tpu.core_type = #tpu.core_type<tc>, window_params = [{transform_indices = @transform_0, window_bounds = array<i64: 16, 128>}, {transform_indices = @transform_1, window_bounds = array<i64: 16, 128>}, {pipeline_mode = #tpu.pipeline_mode<synchronous>, transform_indices = @transform_2, window_bounds = array<i64: 256, 384>}, {pipeline_mode = #tpu.pipeline_mode<synchronous>, transform_indices = @transform_3, window_bounds = array<i64: 128, 128>}, {pipeline_mode = #tpu.pipeline_mode<synchronous>, transform_indices = @transform_4, window_bounds = array<i64: 1, 384>}, {transform_indices = @transform_5, window_bounds = array<i64: 16, 128>}]} {
    %c0 = arith.constant 0 : index
    %c0_0 = arith.constant 0 : index
    %0 = vector.load %arg1[%c0, %c0_0] : memref<16x128xf32, #tpu.memory_space<vmem>>, vector<16x128xf32>
    %c0_1 = arith.constant 0 : index
    %c0_2 = arith.constant 0 : index
    %1 = vector.load %arg2[%c0_1, %c0_2] : memref<16x128xf32, #tpu.memory_space<vmem>>, vector<16x128xf32>
    %2 = tpu.concatenate %1, %0 in 1 : vector<16x128xf32>, vector<16x128xf32> -> vector<16x256xf32>
    %c0_3 = arith.constant 0 : index
    %c0_4 = arith.constant 0 : index
    %3 = vector.load %arg3[%c0_3, %c0_4] : memref<256x384xf32, #tpu.memory_space<vmem>>, vector<256x384xf32>
    %cst = arith.constant dense<0.000000e+00> : vector<16x384xf32>
    %4 = tpu.matmul %2, %3, %cst {dimension_numbers = #tpu.dot_dimension_numbers<[1], [0], [0], [1], [0, 0, 1, 1], [], []>} : vector<16x256xf32>, vector<256x384xf32>, vector<16x384xf32> -> vector<16x384xf32>
    %c0_5 = arith.constant 0 : index
    %c0_6 = arith.constant 0 : index
    %5 = vector.load %arg5[%c0_5, %c0_6] : memref<1x384xf32, #tpu.memory_space<vmem>>, vector<1x384xf32>
    %6 = vector.broadcast %5 : vector<1x384xf32> to vector<16x384xf32>
    %7 = arith.addf %4, %6 : vector<16x384xf32>
    %8 = vector.extract_strided_slice %7 {offsets = [0, 0], sizes = [16, 128], strides = [1, 1]} : vector<16x384xf32> to vector<16x128xf32>
    %cst_7 = arith.constant 5.000000e-01 : f32
    %9 = vector.broadcast %cst_7 : f32 to vector<16x128xf32>
    %10 = arith.mulf %9, %8 : vector<16x128xf32>
    %11 = math.tanh %10 : vector<16x128xf32>
    %cst_8 = arith.constant 5.000000e-01 : f32
    %12 = vector.broadcast %cst_8 : f32 to vector<16x128xf32>
    %13 = arith.mulf %12, %11 : vector<16x128xf32>
    %cst_9 = arith.constant 5.000000e-01 : f32
    %14 = vector.broadcast %cst_9 : f32 to vector<16x128xf32>
    %15 = arith.addf %13, %14 : vector<16x128xf32>
    %16 = vector.extract_strided_slice %7 {offsets = [0, 128], sizes = [16, 128], strides = [1, 1]} : vector<16x384xf32> to vector<16x128xf32>
    %cst_10 = arith.constant 5.000000e-01 : f32
    %17 = vector.broadcast %cst_10 : f32 to vector<16x128xf32>
    %18 = arith.mulf %17, %16 : vector<16x128xf32>
    %19 = math.tanh %18 : vector<16x128xf32>
    %cst_11 = arith.constant 5.000000e-01 : f32
    %20 = vector.broadcast %cst_11 : f32 to vector<16x128xf32>
    %21 = arith.mulf %20, %19 : vector<16x128xf32>
    %cst_12 = arith.constant 5.000000e-01 : f32
    %22 = vector.broadcast %cst_12 : f32 to vector<16x128xf32>
    %23 = arith.addf %21, %22 : vector<16x128xf32>
    %24 = arith.mulf %15, %0 : vector<16x128xf32>
    %25 = vector.extract_strided_slice %7 {offsets = [0, 256], sizes = [16, 128], strides = [1, 1]} : vector<16x384xf32> to vector<16x128xf32>
    %c0_13 = arith.constant 0 : index
    %c0_14 = arith.constant 0 : index
    %26 = vector.load %arg4[%c0_13, %c0_14] : memref<128x128xf32, #tpu.memory_space<vmem>>, vector<128x128xf32>
    %cst_15 = arith.constant dense<0.000000e+00> : vector<16x128xf32>
    %27 = tpu.matmul %24, %26, %cst_15 {dimension_numbers = #tpu.dot_dimension_numbers<[1], [0], [0], [1], [0, 0, 1, 1], [], []>} : vector<16x128xf32>, vector<128x128xf32>, vector<16x128xf32> -> vector<16x128xf32>
    %28 = arith.addf %25, %27 : vector<16x128xf32>
    %29 = math.tanh %28 : vector<16x128xf32>
    %cst_16 = arith.constant 1.000000e+00 : f32
    %30 = vector.broadcast %cst_16 : f32 to vector<16x128xf32>
    %31 = arith.subf %30, %23 : vector<16x128xf32>
    %32 = arith.mulf %31, %0 : vector<16x128xf32>
    %33 = arith.mulf %23, %29 : vector<16x128xf32>
    %34 = arith.addf %32, %33 : vector<16x128xf32>
    %c0_17 = arith.constant 0 : index
    %c0_18 = arith.constant 0 : index
    %35 = vector.load %arg6[%c0_17, %c0_18] : memref<16x128xf32, #tpu.memory_space<vmem>>, vector<16x128xf32>
    tpu.vector_store %arg6[%c0_17, %c0_18], %34 {strides = array<i32>} : memref<16x128xf32, #tpu.memory_space<vmem>>, vector<16x128xf32>,
    return
  }
  func.func @transform_0(%arg0: i32) -> (i32, i32) {
    %c0_i32 = arith.constant 0 : i32
    %c0_i32_0 = arith.constant 0 : i32
    return %arg0, %c0_i32 : i32, i32
  }
  func.func @transform_1(%arg0: i32) -> (i32, i32) {
    %c0_i32 = arith.constant 0 : i32
    %c0_i32_0 = arith.constant 0 : i32
    return %arg0, %c0_i32 : i32, i32
  }
  func.func @transform_2(%arg0: i32) -> (i32, i32) {
    %c0_i32 = arith.constant 0 : i32
    %c0_i32_0 = arith.constant 0 : i32
    %c0_i32_1 = arith.constant 0 : i32
    return %c0_i32, %c0_i32_0 : i32, i32
  }
  func.func @transform_3(%arg0: i32) -> (i32, i32) {
    %c0_i32 = arith.constant 0 : i32
    %c0_i32_0 = arith.constant 0 : i32
    %c0_i32_1 = arith.constant 0 : i32
    return %c0_i32, %c0_i32_0 : i32, i32
  }
  func.func @transform_4(%arg0: i32) -> (i32, i32) {
    %c0_i32 = arith.constant 0 : i32
    %c0_i32_0 = arith.constant 0 : i32
    %c0_i32_1 = arith.constant 0 : i32
    return %c0_i32, %c0_i32_0 : i32, i32
  }
  func.func @transform_5(%arg0: i32) -> (i32, i32) {
    %c0_i32 = arith.constant 0 : i32
    %c0_i32_0 = arith.constant 0 : i32
    return %arg0, %c0_i32 : i32, i32
  }
}

module attributes {stable_mosaic.version = 11 : i64} {
  func.func @_gru_gate_kernel(%arg0: i32, %arg1: memref<16x128xf32, #tpu.memory_space<vmem>>, %arg2: memref<16x128xf32, #tpu.memory_space<vmem>>, %arg3: memref<256x384xf32, #tpu.memory_space<vmem>>, %arg4: memref<128x128xf32, #tpu.memory_space<vmem>>, %arg5: memref<1x384xf32, #tpu.memory_space<vmem>>, %arg6: memref<16x128xf32, #tpu.memory_space<vmem>>) attributes {dimension_semantics = [#tpu.dimension_semantics<parallel>], iteration_bounds = array<i64: 1>, scalar_prefetch = 0 : i64, scratch_operands = 0 : i64, tpu.core_type = #tpu.core_type<tc>, window_params = [{transform_indices = @transform_0, window_bounds = array<i64: 16, 128>}, {transform_indices = @transform_1, window_bounds = array<i64: 16, 128>}, {pipeline_mode = #tpu.pipeline_mode<synchronous>, transform_indices = @transform_2, window_bounds = array<i64: 256, 384>}, {pipeline_mode = #tpu.pipeline_mode<synchronous>, transform_indices = @transform_3, window_bounds = array<i64: 128, 128>}, {pipeline_mode = #tpu.pipeline_mode<synchronous>, transform_indices = @transform_4, window_bounds = array<i64: 1, 384>}, {transform_indices = @transform_5, window_bounds = array<i64: 16, 128>}]} {
    %c0 = arith.constant 0 : index
    %c0_0 = arith.constant 0 : index
    %0 = vector.load %arg1[%c0, %c0_0] : memref<16x128xf32, #tpu.memory_space<vmem>>, vector<16x128xf32>
    %c0_1 = arith.constant 0 : index
    %c0_2 = arith.constant 0 : index
    %1 = vector.load %arg2[%c0_1, %c0_2] : memref<16x128xf32, #tpu.memory_space<vmem>>, vector<16x128xf32>
    %2 = tpu.concatenate %1, %0 in 1 : vector<16x128xf32>, vector<16x128xf32> -> vector<16x256xf32>
    %c0_3 = arith.constant 0 : index
    %c0_4 = arith.constant 0 : index
    %3 = vector.load %arg3[%c0_3, %c0_4] : memref<256x384xf32, #tpu.memory_space<vmem>>, vector<256x384xf32>
    %cst = arith.constant dense<0.000000e+00> : vector<16x384xf32>
    %4 = tpu.matmul %2, %3, %cst {dimension_numbers = #tpu.dot_dimension_numbers<[1], [0], [0], [1], [0, 0, 1, 1], [], []>} : vector<16x256xf32>, vector<256x384xf32>, vector<16x384xf32> -> vector<16x384xf32>
    %c0_5 = arith.constant 0 : index
    %c0_6 = arith.constant 0 : index
    %5 = vector.load %arg5[%c0_5, %c0_6] : memref<1x384xf32, #tpu.memory_space<vmem>>, vector<1x384xf32>
    %6 = vector.broadcast %5 : vector<1x384xf32> to vector<16x384xf32>
    %7 = arith.addf %4, %6 : vector<16x384xf32>
    %8 = vector.extract_strided_slice %7 {offsets = [0, 0], sizes = [16, 128], strides = [1, 1]} : vector<16x384xf32> to vector<16x128xf32>
    %cst_7 = arith.constant 5.000000e-01 : f32
    %9 = vector.broadcast %cst_7 : f32 to vector<16x128xf32>
    %10 = arith.mulf %9, %8 : vector<16x128xf32>
    %11 = math.tanh %10 : vector<16x128xf32>
    %cst_8 = arith.constant 5.000000e-01 : f32
    %12 = vector.broadcast %cst_8 : f32 to vector<16x128xf32>
    %13 = arith.mulf %12, %11 : vector<16x128xf32>
    %cst_9 = arith.constant 5.000000e-01 : f32
    %14 = vector.broadcast %cst_9 : f32 to vector<16x128xf32>
    %15 = arith.addf %13, %14 : vector<16x128xf32>
    %16 = vector.extract_strided_slice %7 {offsets = [0, 128], sizes = [16, 128], strides = [1, 1]} : vector<16x384xf32> to vector<16x128xf32>
    %cst_10 = arith.constant 5.000000e-01 : f32
    %17 = vector.broadcast %cst_10 : f32 to vector<16x128xf32>
    %18 = arith.mulf %17, %16 : vector<16x128xf32>
    %19 = math.tanh %18 : vector<16x128xf32>
    %cst_11 = arith.constant 5.000000e-01 : f32
    %20 = vector.broadcast %cst_11 : f32 to vector<16x128xf32>
    %21 = arith.mulf %20, %19 : vector<16x128xf32>
    %cst_12 = arith.constant 5.000000e-01 : f32
    %22 = vector.broadcast %cst_12 : f32 to vector<16x128xf32>
    %23 = arith.addf %21, %22 : vector<16x128xf32>
    %24 = arith.mulf %15, %0 : vector<16x128xf32>
    %25 = vector.extract_strided_slice %7 {offsets = [0, 256], sizes = [16, 128], strides = [1, 1]} : vector<16x384xf32> to vector<16x128xf32>
    %c0_13 = arith.constant 0 : index
    %c0_14 = arith.constant 0 : index
    %26 = vector.load %arg4[%c0_13, %c0_14] : memref<128x128xf32, #tpu.memory_space<vmem>>, vector<128x128xf32>
    %cst_15 = arith.constant dense<0.000000e+00> : vector<16x128xf32>
    %27 = tpu.matmul %24, %26, %cst_15 {dimension_numbers = #tpu.dot_dimension_numbers<[1], [0], [0], [1], [0, 0, 1, 1], [], []>} : vector<16x128xf32>, vector<128x128xf32>, vector<16x128xf32> -> vector<16x128xf32>
    %28 = arith.addf %25, %27 : vector<16x128xf32>
    %29 = math.tanh %28 : vector<16x128xf32>
    %cst_16 = arith.constant 1.000000e+00 : f32
    %30 = vector.broadcast %cst_16 : f32 to vector<16x128xf32>
    %31 = arith.subf %30, %23 : vector<16x128xf32>
    %32 = arith.mulf %31, %0 : vector<16x128xf32>
    %33 = arith.mulf %23, %29 : vector<16x128xf32>
    %34 = arith.addf %32, %33 : vector<16x128xf32>
    %c0_17 = arith.constant 0 : index
    %c0_18 = arith.constant 0 : index
    %35 = vector.load %arg6[%c0_17, %c0_18] : memref<16x128xf32, #tpu.memory_space<vmem>>, vector<16x128xf32>
    tpu.vector_store %arg6[%c0_17, %c0_18], %34 {strides = array<i32>} : memref<16x128xf32, #tpu.memory_space<vmem>>, vector<16x128xf32>,
    return
  }
  func.func @transform_0(%arg0: i32) -> (i32, i32) {
    %c0_i32 = arith.constant 0 : i32
    %c0_i32_0 = arith.constant 0 : i32
    return %arg0, %c0_i32 : i32, i32
  }
  func.func @transform_1(%arg0: i32) -> (i32, i32) {
    %c0_i32 = arith.constant 0 : i32
    %c0_i32_0 = arith.constant 0 : i32
    return %arg0, %c0_i32 : i32, i32
  }
  func.func @transform_2(%arg0: i32) -> (i32, i32) {
    %c0_i32 = arith.constant 0 : i32
    %c0_i32_0 = arith.constant 0 : i32
    %c0_i32_1 = arith.constant 0 : i32
    return %c0_i32, %c0_i32_0 : i32, i32
  }
  func.func @transform_3(%arg0: i32) -> (i32, i32) {
    %c0_i32 = arith.constant 0 : i32
    %c0_i32_0 = arith.constant 0 : i32
    %c0_i32_1 = arith.constant 0 : i32
    return %c0_i32, %c0_i32_0 : i32, i32
  }
  func.func @transform_4(%arg0: i32) -> (i32, i32) {
    %c0_i32 = arith.constant 0 : i32
    %c0_i32_0 = arith.constant 0 : i32
    %c0_i32_1 = arith.constant 0 : i32
    return %c0_i32, %c0_i32_0 : i32, i32
  }
  func.func @transform_5(%arg0: i32) -> (i32, i32) {
    %c0_i32 = arith.constant 0 : i32
    %c0_i32_0 = arith.constant 0 : i32
    return %arg0, %c0_i32 : i32, i32
  }
}

</mosaic_0001>

<bundles_post_ra>
// kernel: tpu_custom_call.1
= control target key start
LH: loop header
LB: loop body
LE: loop exit
PB: predicated region body
PF: predicated region fallthrough
CT: control target
= control target key end

     0   :  { %10 = vsyncpa [#allocation3], 0  ;;  %s680_s0 = inlined_call_operand.hbm [shape: f32[16,128], index: 0, kind: input, shape index: {}]   ;;  %s681_s1 = inlined_call_operand.hbm [shape: f32[16,128], index: 1, kind: input, shape index: {}]   ;;  %s682_s2 = inlined_call_operand.hbm [shape: f32[256,384], index: 2, kind: input, shape index: {}]   ;;  %s683_s3 = inlined_call_operand.hbm [shape: f32[128,128], index: 3, kind: input, shape index: {}]   ;;  %s684_s4 = inlined_call_operand.vmem [shape: f32[1,384], index: 4, kind: input, shape index: {}]   ;;  %s685_s5 = inlined_call_operand.hbm [shape: f32[16,128], index: 5, kind: output, shape index: {}]  }
   0x1   :  { %11 = vsyncpa [#allocation6], 0 }
   0x2   :  { %12 = vsyncpa [#allocation9], 0 }
   0x3   :  { %13 = vsyncpa [#allocation4], 0  ;;  %s31_s20 = sshll.u32 %s681_s1, 4  ;;  %s587_s21 = smov [#allocation5]   ;;  %s32_s20 = int_to_ptr.hbm [resolvable:$true] %s31_s20 }
   0x4   :  { %s33_s22 = sshll.u32 %s587_s21, 4  ;;  %s18_s25 = sshll.u32 %s680_s0, 4  ;;  %s34_s22 = int_to_ptr.vmem [resolvable:$true] %s33_s22  ;;  %s19_s25 = int_to_ptr.hbm [resolvable:$true] %s18_s25 }
   0x5   :  { %s588_s26 = smov 128   ;;  %s589_s27 = smov 8  }
   0x6   :  { %39 = dma.hbm_to_vmem [thread:$0]  %s32_s20, 256, %s34_s22, [#allocation6], %s588_s26, %s588_s26, %s589_s27  }
   0x7   :  { %s590_s28 = smov [#allocation2]   ;;  %s44_s1 = sshll.u32 %s682_s2, 4  ;;  %s45_s1 = int_to_ptr.hbm [resolvable:$true] %s44_s1 }
   0x8   :  { %s20_s29 = sshll.u32 %s590_s28, 4  ;;  %s591_s0 = smov [#allocation7]   ;;  %s21_s29 = int_to_ptr.vmem [resolvable:$true] %s20_s29 }
   0x9   :  { %26 = dma.hbm_to_vmem [thread:$0]  %s19_s25, 256, %s21_s29, [#allocation3], %s588_s26, %s588_s26, %s589_s27  }
   0xa   :  { %s46_s7 = sshll.u32 %s591_s0, 4  ;;  %s57_s10 = sshll.u32 %s683_s3, 4  ;;  %s47_s7 = int_to_ptr.vmem [resolvable:$true] %s46_s7  ;;  %s58_s10 = int_to_ptr.hbm [resolvable:$true] %s57_s10 }
   0xb   :  { %s592_s11 = smov 384   ;;  %s593_s12 = smov 24  }
   0xc   :  { %52 = dma.hbm_to_vmem [thread:$0]  %s45_s1, 12288, %s47_s7, [#allocation6], %s592_s11, %s592_s11, %s593_s12  }
   0xd   :  { %s594_s13 = smov [#allocation8]  }
   0xe   :  { %s59_s14 = sshll.u32 %s594_s13, 4  ;;  %s60_s14 = int_to_ptr.vmem [resolvable:$true] %s59_s14 }
   0xf   :  { %65 = dma.hbm_to_vmem [thread:$0]  %s58_s10, 2048, %s60_s14, [#allocation9], %s588_s26, %s588_s26, %s589_s27  }
  0x10   :  { %579 = dma.done.wait [#allocation3], 256  }
  0x11   :  { %580 = vsyncadd [#allocation3], 4294967040 }
  0x12   :  { %581 = dma.done.wait [#allocation6], 12544  }
  0x13   :  { %582 = vsyncadd [#allocation6], 4294954752 }
  0x14   :  { %583 = dma.done.wait [#allocation9], 2048  }
  0x15   :  { %584 = vsyncadd [#allocation9], 4294965248  ;;  %v133_v0 = vld [vmem:[#allocation7 + $0x168] sm:$0xff]  ;;  %v130_v1 = vld [vmem:[#allocation7 + $0x150] sm:$0xff]  ;;  %s407_s18 = sshll.u32 %s685_s5, 4  ;;  %s408_s18 = int_to_ptr.hbm [resolvable:$true] %s407_s18 }
  0x16   :  { %v181_v2 = vld [vmem:[#allocation7 + $0x2e8] sm:$0xff]  ;;  %192 = vmatpush.msra.mxu0 %v133_v0  ;;  %v178_v3 = vld [vmem:[#allocation7 + $0x2d0] sm:$0xff]  ;;  %v127_v4 = vld [vmem:[#allocation7 + $0x138] sm:$0xff] }
  0x17   :  { %215 = vmatpush.msra.mxu1 %v181_v2  ;;  %v175_v5 = vld [vmem:[#allocation7 + $0x2b8] sm:$0xff]  ;;  %v124_v6 = vld [vmem:[#allocation7 + $0x120] sm:$0xff]  ;;  %v121_v8 = vld [vmem:[#allocation7 + $0x108] sm:$0xff] }
  0x18   :  { %193 = vmatpush.msra.mxu0 %v130_v1  ;;  %v172_v7 = vld [vmem:[#allocation7 + $0x2a0] sm:$0xff]  ;;  %v169_v9 = vld [vmem:[#allocation7 + $0x288] sm:$0xff]  ;;  %v118_v10 = vld [vmem:[#allocation7 + $0xf0] sm:$0xff] }
  0x19   :  { %216 = vmatpush.msra.mxu1 %v178_v3  ;;  %v166_v11 = vld [vmem:[#allocation7 + $0x270] sm:$0xff]  ;;  %v115_v12 = vld [vmem:[#allocation7 + $0xd8] sm:$0xff]  ;;  %v112_v14 = vld [vmem:[#allocation7 + $0xc0] sm:$0xff] }
  0x1a   :  { %194 = vmatpush.msra.mxu0 %v127_v4  ;;  %v163_v13 = vld [vmem:[#allocation7 + $0x258] sm:$0xff]  ;;  %v160_v15 = vld [vmem:[#allocation7 + $0x240] sm:$0xff]  ;;  %v134_v16 = vld [vmem:[#allocation7 + $0x170] sm:$0xff] }
  0x1b   :  { %217 = vmatpush.msra.mxu1 %v175_v5  ;;  %v131_v17 = vld [vmem:[#allocation7 + $0x158] sm:$0xff]  ;;  %v182_v18 = vld [vmem:[#allocation7 + $0x2f0] sm:$0xff]  ;;  %v109_v20 = vld [vmem:[#allocation7 + $0xa8] sm:$0xff]  ;;  %238 = vmatpush.msra.mxu2 %v134_v16 }
  0x1c   :  { %195 = vmatpush.msra.mxu0 %v124_v6  ;;  %v179_v19 = vld [vmem:[#allocation7 + $0x2d8] sm:$0xff]  ;;  %v157_v21 = vld [vmem:[#allocation7 + $0x228] sm:$0xff]  ;;  %261 = vmatpush.msra.mxu3 %v182_v18  ;;  %v128_v22 = vld [vmem:[#allocation7 + $0x140] sm:$0xff] }
  0x1d   :  { %218 = vmatpush.msra.mxu1 %v172_v7  ;;  %v176_v23 = vld [vmem:[#allocation7 + $0x2c0] sm:$0xff]  ;;  %v106_v24 = vld [vmem:[#allocation7 + $0x90] sm:$0xff]  ;;  %239 = vmatpush.msra.mxu2 %v131_v17  ;;  %v125_v26 = vld [vmem:[#allocation7 + $0x128] sm:$0xff] }
  0x1e   :  { %196 = vmatpush.msra.mxu0 %v121_v8  ;;  %v154_v25 = vld [vmem:[#allocation7 + $0x210] sm:$0xff]  ;;  %262 = vmatpush.msra.mxu3 %v179_v19  ;;  %v173_v27 = vld [vmem:[#allocation7 + $0x2a8] sm:$0xff]  ;;  %v103_v28 = vld [vmem:[#allocation7 + $0x78] sm:$0xff] }
  0x1f   :  { %219 = vmatpush.msra.mxu1 %v169_v9  ;;  %v151_v29 = vld [vmem:[#allocation7 + $0x1f8] sm:$0xff]  ;;  %240 = vmatpush.msra.mxu2 %v128_v22  ;;  %v122_v30 = vld [vmem:[#allocation7 + $0x110] sm:$0xff]  ;;  %v100_v32 = vld [vmem:[#allocation7 + $0x60] sm:$0xff] }
  0x20   :  { %197 = vmatpush.msra.mxu0 %v118_v10  ;;  %263 = vmatpush.msra.mxu3 %v176_v23  ;;  %v170_v31 = vld [vmem:[#allocation7 + $0x290] sm:$0xff]  ;;  %v148_v33 = vld [vmem:[#allocation7 + $0x1e0] sm:$0xff]  ;;  %v119_v34 = vld [vmem:[#allocation7 + $0xf8] sm:$0xff] }
  0x21   :  { %220 = vmatpush.msra.mxu1 %v166_v11  ;;  %241 = vmatpush.msra.mxu2 %v125_v26  ;;  %v167_v35 = vld [vmem:[#allocation7 + $0x278] sm:$0xff]  ;;  %v97_v36 = vld [vmem:[#allocation7 + $0x48] sm:$0xff]  ;;  %v116_v38 = vld [vmem:[#allocation7 + $0xe0] sm:$0xff] }
  0x22   :  { %198 = vmatpush.msra.mxu0 %v115_v12  ;;  %264 = vmatpush.msra.mxu3 %v173_v27  ;;  %v145_v37 = vld [vmem:[#allocation7 + $0x1c8] sm:$0xff]  ;;  %v164_v39 = vld [vmem:[#allocation7 + $0x260] sm:$0xff]  ;;  %v94_v40 = vld [vmem:[#allocation7 + $0x30] sm:$0xff] }
  0x23   :  { %221 = vmatpush.msra.mxu1 %v163_v13  ;;  %242 = vmatpush.msra.mxu2 %v122_v30  ;;  %v142_v41 = vld [vmem:[#allocation7 + $0x1b0] sm:$0xff]  ;;  %v113_v42 = vld [vmem:[#allocation7 + $0xc8] sm:$0xff]  ;;  %v91_v44 = vld [vmem:[#allocation7 + $0x18] sm:$0xff] }
  0x24   :  { %199 = vmatpush.msra.mxu0 %v112_v14  ;;  %265 = vmatpush.msra.mxu3 %v170_v31  ;;  %v161_v43 = vld [vmem:[#allocation7 + $0x248] sm:$0xff]  ;;  %v139_v45 = vld [vmem:[#allocation7 + $0x198] sm:$0xff]  ;;  %v110_v46 = vld [vmem:[#allocation7 + $0xb0] sm:$0xff] }
  0x25   :  { %222 = vmatpush.msra.mxu1 %v160_v15  ;;  %243 = vmatpush.msra.mxu2 %v119_v34  ;;  %v158_v47 = vld [vmem:[#allocation7 + $0x230] sm:$0xff]  ;;  %v88_v48 = vld [vmem:[#allocation7] sm:$0xff]  ;;  %v107_v52 = vld [vmem:[#allocation7 + $0x98] sm:$0xff] }
  0x26   :  { %200 = vmatpush.msra.mxu0 %v109_v20  ;;  %266 = vmatpush.msra.mxu3 %v167_v35  ;;  %v136_v49 = vld [vmem:[#allocation7 + $0x180] sm:$0xff]  ;;  %v647_v50 = vld [vmem:[#allocation5] sm:$0xff]  ;;  %v155_v53 = vld [vmem:[#allocation7 + $0x218] sm:$0xff] }
  0x27   :  { %223 = vmatpush.msra.mxu1 %v157_v21  ;;  %244 = vmatpush.msra.mxu2 %v116_v38  ;;  %v649_v51 = vld [vmem:[#allocation2] sm:$0xff]  ;;  %v135_v54 = vld [vmem:[#allocation7 + $0x178] sm:$0xff]  ;;  %v101_v60 = vld [vmem:[#allocation7 + $0x68] sm:$0xff] }
  0x28   :  { %201 = vmatpush.msra.mxu0 %v106_v24  ;;  %267 = vmatpush.msra.mxu3 %v164_v39  ;;  %v183_v55 = vld [vmem:[#allocation7 + $0x2f8] sm:$0xff]  ;;  %v104_v56 = vld [vmem:[#allocation7 + $0x80] sm:$0xff]  ;;  %v149_v61 = vld [vmem:[#allocation7 + $0x1e8] sm:$0xff] }
  0x29   :  { %224 = vmatpush.msra.mxu1 %v154_v25  ;;  %245 = vmatpush.msra.mxu2 %v113_v42  ;;  %v152_v57 = vld [vmem:[#allocation7 + $0x200] sm:$0xff]  ;;  %v129_v62 = vld [vmem:[#allocation7 + $0x148] sm:$0xff]  ;;  %v98_v0 = vld [vmem:[#allocation7 + $0x50] sm:$0xff] }
  0x2a   :  { %202 = vmatpush.msra.mxu0 %v103_v28  ;;  %268 = vmatpush.msra.mxu3 %v161_v43  ;;  %v132_v58 = vld [vmem:[#allocation7 + $0x160] sm:$0xff]  ;;  %v177_v63 = vld [vmem:[#allocation7 + $0x2c8] sm:$0xff]  ;;  %v146_v1 = vld [vmem:[#allocation7 + $0x1d0] sm:$0xff] }
  0x2b   :  { %225 = vmatpush.msra.mxu1 %v151_v29  ;;  %246 = vmatpush.msra.mxu2 %v110_v46  ;;  %v180_v59 = vld [vmem:[#allocation7 + $0x2e0] sm:$0xff]  ;;  %v653_v2 = vld [vmem:[#allocation5 + $0x8] sm:$0xff]  ;;  %v655_v3 = vld [vmem:[#allocation2 + $0x8] sm:$0xff] }
  0x2c   :  { %203 = vmatpush.msra.mxu0 %v100_v32  ;;  %269 = vmatpush.msra.mxu3 %v158_v47  ;;  %v95_v4 = vld [vmem:[#allocation7 + $0x38] sm:$0xff]  ;;  %v126_v6 = vld [vmem:[#allocation7 + $0x130] sm:$0xff]  ;;  %v92_v8 = vld [vmem:[#allocation7 + $0x20] sm:$0xff] }
  0x2d   :  { %226 = vmatpush.msra.mxu1 %v148_v33  ;;  %247 = vmatpush.msra.mxu2 %v107_v52  ;;  %v143_v5 = vld [vmem:[#allocation7 + $0x1b8] sm:$0xff]  ;;  %v174_v7 = vld [vmem:[#allocation7 + $0x2b0] sm:$0xff]  ;;  %v140_v9 = vld [vmem:[#allocation7 + $0x1a0] sm:$0xff] }
  0x2e   :  { %204 = vmatpush.msra.mxu0 %v97_v36  ;;  %270 = vmatpush.msra.mxu3 %v155_v53  ;;  %v123_v10 = vld [vmem:[#allocation7 + $0x118] sm:$0xff]  ;;  %v89_v11 = vld [vmem:[#allocation7 + $0x8] sm:$0xff]  ;;  %v362_v14 = vld [vmem:[#allocation8 + $0x70] sm:$0xff] }
  0x2f   :  { %227 = vmatpush.msra.mxu1 %v145_v37  ;;  %248 = vmatpush.msra.mxu2 %v104_v56  ;;  %v137_v12 = vld [vmem:[#allocation7 + $0x188] sm:$0xff]  ;;  %v363_v13 = vld [vmem:[#allocation8 + $0x78] sm:$0xff]  ;;  %v360_v16 = vld [vmem:[#allocation8 + $0x60] sm:$0xff] }
  0x30   :  { %205 = vmatpush.msra.mxu0 %v94_v40  ;;  %271 = vmatpush.msra.mxu3 %v152_v57  ;;  %v361_v15 = vld [vmem:[#allocation8 + $0x68] sm:$0xff]  ;;  %v359_v17 = vld [vmem:[#allocation8 + $0x58] sm:$0xff]  ;;  %v358_v18 = vld [vmem:[#allocation8 + $0x50] sm:$0xff] }
  0x31   :  { %228 = vmatpush.msra.mxu1 %v142_v41  ;;  %249 = vmatpush.msra.mxu2 %v101_v60  ;;  %v120_v19 = vld [vmem:[#allocation7 + $0x100] sm:$0xff]  ;;  %v171_v20 = vld [vmem:[#allocation7 + $0x298] sm:$0xff]  ;;  %v357_v21 = vld [vmem:[#allocation8 + $0x48] sm:$0xff] }
  0x32   :  { %206 = vmatpush.msra.mxu0 %v91_v44  ;;  %272 = vmatpush.msra.mxu3 %v149_v61  ;;  %v117_v22 = vld [vmem:[#allocation7 + $0xe8] sm:$0xff]  ;;  %v168_v23 = vld [vmem:[#allocation7 + $0x280] sm:$0xff]  ;;  %v114_v25 = vld [vmem:[#allocation7 + $0xd0] sm:$0xff] }
  0x33   :  { %229 = vmatpush.msra.mxu1 %v139_v45  ;;  %250 = vmatpush.msra.mxu2 %v98_v0  ;;  %v356_v24 = vld [vmem:[#allocation8 + $0x40] sm:$0xff]  ;;  %v165_v26 = vld [vmem:[#allocation7 + $0x268] sm:$0xff]  ;;  %v355_v27 = vld [vmem:[#allocation8 + $0x38] sm:$0xff] }
  0x34   :  { %207 = vmatpush.msra.mxu0 %v88_v48  ;;  %273 = vmatpush.msra.mxu3 %v146_v1  ;;  %v111_v28 = vld [vmem:[#allocation7 + $0xb8] sm:$0xff]  ;;  %v162_v29 = vld [vmem:[#allocation7 + $0x250] sm:$0xff]  ;;  %v108_v31 = vld [vmem:[#allocation7 + $0xa0] sm:$0xff] }
  0x35   :  { %230 = vmatpush.msra.mxu1 %v136_v49  ;;  %208 = vmatmul.f32.vlgmr.msra.gmra.mxu0 %v647_v50  ;;  %v354_v30 = vld [vmem:[#allocation8 + $0x30] sm:$0xff]  ;;  %v159_v32 = vld [vmem:[#allocation7 + $0x238] sm:$0xff]  ;;  %v353_v33 = vld [vmem:[#allocation8 + $0x28] sm:$0xff] }
  0x36   :  { %231 = vmatmul.f32.vlgmr.msra.gmra.mxu1 %v649_v51  ;;  %284 = vmatpush.msrb.mxu0 %v135_v54  ;;  %v105_v34 = vld [vmem:[#allocation7 + $0x88] sm:$0xff]  ;;  %v156_v35 = vld [vmem:[#allocation7 + $0x220] sm:$0xff]  ;;  %v102_v37 = vld [vmem:[#allocation7 + $0x70] sm:$0xff] }
  0x37   :  { %307 = vmatpush.msrb.mxu1 %v183_v55  ;;  %251 = vmatpush.msra.mxu2 %v95_v4  ;;  %v352_v36 = vld [vmem:[#allocation8 + $0x20] sm:$0xff]  ;;  %v153_v38 = vld [vmem:[#allocation7 + $0x208] sm:$0xff]  ;;  %v351_v39 = vld [vmem:[#allocation8 + $0x18] sm:$0xff] }
  0x38   :  { %285 = vmatpush.msrb.mxu0 %v132_v58  ;;  %274 = vmatpush.msra.mxu3 %v143_v5  ;;  %v99_v40 = vld [vmem:[#allocation7 + $0x58] sm:$0xff]  ;;  %v150_v41 = vld [vmem:[#allocation7 + $0x1f0] sm:$0xff]  ;;  %v96_v43 = vld [vmem:[#allocation7 + $0x40] sm:$0xff] }
  0x39   :  { %308 = vmatpush.msrb.mxu1 %v180_v59  ;;  %252 = vmatpush.msra.mxu2 %v92_v8  ;;  %v350_v42 = vld [vmem:[#allocation8 + $0x10] sm:$0xff]  ;;  %v147_v44 = vld [vmem:[#allocation7 + $0x1d8] sm:$0xff]  ;;  %v349_v45 = vld [vmem:[#allocation8 + $0x8] sm:$0xff] }
  0x3a   :  { %286 = vmatpush.msrb.mxu0 %v129_v62  ;;  %275 = vmatpush.msra.mxu3 %v140_v9  ;;  %v93_v46 = vld [vmem:[#allocation7 + $0x28] sm:$0xff]  ;;  %v144_v47 = vld [vmem:[#allocation7 + $0x1c0] sm:$0xff]  ;;  %v90_v49 = vld [vmem:[#allocation7 + $0x10] sm:$0xff] }
  0x3b   :  { %309 = vmatpush.msrb.mxu1 %v177_v63  ;;  %253 = vmatpush.msra.mxu2 %v89_v11  ;;  %v348_v48 = vld [vmem:[#allocation8] sm:$0xff]  ;;  %v141_v52 = vld [vmem:[#allocation7 + $0x1a8] sm:$0xff]  ;;  %v138_v53 = vld [vmem:[#allocation7 + $0x190] sm:$0xff] }
  0x3c   :  { %287 = vmatpush.msrb.mxu0 %v126_v6  ;;  %276 = vmatpush.msra.mxu3 %v137_v12 }
  0x3d   :  { %211 = vmatmul.f32.gmra.mxu0 %v653_v2  ;;  %310 = vmatpush.msrb.mxu1 %v174_v7 }
  0x3e   :  { %234 = vmatmul.f32.gmra.mxu1 %v655_v3  ;;  %288 = vmatpush.msrb.mxu0 %v123_v10 }
  0x3f   :  { %364 = vmatpush.msrb.mxu2 %v363_v13  ;;  %422 = vmatpush.msrb.mxu3 %v135_v54  ;;  %v184_v54 = vld [vmem:[%s684_s4] sm:$0x7]  ;;  %s595_s4 = smov [#allocation10]  }
  0x40   :  { %254 = vmatmul.f32.vlgmr.msra.gmra.mxu2 %v647_v50  ;;  %277 = vmatmul.f32.vlgmr.msra.gmra.mxu3 %v649_v51  ;;  %v186_v55 = vperm.slane %v184_v54, 0  ;;  %v187_v11 = vperm.slane %v184_v54, 1  ;;  %s405_s15 = sshll.u32 %s595_s4, 4  ;;  %s406_s15 = int_to_ptr.vmem [resolvable:$true] %s405_s15 }
  0x41   :  { %365 = vmatpush.msrb.mxu2 %v362_v14  ;;  %423 = vmatpush.msrb.mxu3 %v132_v58 }
  0x42   :  { %289 = vmatpush.msrb.mxu0 %v120_v19  ;;  %311 = vmatpush.msrb.mxu1 %v171_v20  ;;  %v188_v20 = vperm.slane %v184_v54, 2 }
  0x43   :  { %366 = vmatpush.msrb.mxu2 %v361_v15  ;;  %424 = vmatpush.msrb.mxu3 %v129_v62 }
  0x44   :  { %290 = vmatpush.msrb.mxu0 %v117_v22  ;;  %312 = vmatpush.msrb.mxu1 %v168_v23 }
  0x45   :  { %367 = vmatpush.msrb.mxu2 %v360_v16  ;;  %425 = vmatpush.msrb.mxu3 %v126_v6 }
  0x46   :  { %291 = vmatpush.msrb.mxu0 %v114_v25  ;;  %313 = vmatpush.msrb.mxu1 %v165_v26 }
  0x47   :  { %368 = vmatpush.msrb.mxu2 %v359_v17  ;;  %426 = vmatpush.msrb.mxu3 %v123_v10 }
  0x48   :  { %257 = vmatmul.f32.gmra.mxu2 %v653_v2  ;;  %280 = vmatmul.f32.gmra.mxu3 %v655_v3 }
  0x49   :  { %369 = vmatpush.msrb.mxu2 %v358_v18  ;;  %427 = vmatpush.msrb.mxu3 %v120_v19 }
  0x4a   :  { %292 = vmatpush.msrb.mxu0 %v111_v28  ;;  %314 = vmatpush.msrb.mxu1 %v162_v29 }
  0x4b   :  { %370 = vmatpush.msrb.mxu2 %v357_v21  ;;  %428 = vmatpush.msrb.mxu3 %v117_v22 }
  0x4c   :  { %293 = vmatpush.msrb.mxu0 %v108_v31  ;;  %315 = vmatpush.msrb.mxu1 %v159_v32 }
  0x4d   :  { %371 = vmatpush.msrb.mxu2 %v356_v24  ;;  %429 = vmatpush.msrb.mxu3 %v114_v25 }
  0x4e   :  { %294 = vmatpush.msrb.mxu0 %v105_v34  ;;  %316 = vmatpush.msrb.mxu1 %v156_v35 }
  0x4f   :  { %372 = vmatpush.msrb.mxu2 %v355_v27  ;;  %430 = vmatpush.msrb.mxu3 %v111_v28 }
  0x50   :  { %295 = vmatpush.msrb.mxu0 %v102_v37  ;;  %317 = vmatpush.msrb.mxu1 %v153_v38 }
  0x51   :  { %373 = vmatpush.msrb.mxu2 %v354_v30  ;;  %431 = vmatpush.msrb.mxu3 %v108_v31 }
  0x52   :  { %296 = vmatpush.msrb.mxu0 %v99_v40  ;;  %318 = vmatpush.msrb.mxu1 %v150_v41 }
  0x53   :  { %374 = vmatpush.msrb.mxu2 %v353_v33  ;;  %432 = vmatpush.msrb.mxu3 %v105_v34 }
  0x54   :  { %297 = vmatpush.msrb.mxu0 %v96_v43  ;;  %319 = vmatpush.msrb.mxu1 %v147_v44 }
  0x55   :  { %375 = vmatpush.msrb.mxu2 %v352_v36  ;;  %433 = vmatpush.msrb.mxu3 %v102_v37 }
  0x56   :  { %298 = vmatpush.msrb.mxu0 %v93_v46  ;;  %320 = vmatpush.msrb.mxu1 %v144_v47 }
  0x57   :  { %376 = vmatpush.msrb.mxu2 %v351_v39  ;;  %434 = vmatpush.msrb.mxu3 %v99_v40 }
  0x58   :  { %299 = vmatpush.msrb.mxu0 %v90_v49  ;;  %321 = vmatpush.msrb.mxu1 %v141_v52 }
  0x59   :  { %377 = vmatpush.msrb.mxu2 %v350_v42  ;;  %435 = vmatpush.msrb.mxu3 %v96_v43 }
  0x5a   :  { %300 = vmatmul.f32.vlgmr.msrb.gmra.mxu0 %v647_v50  ;;  %322 = vmatpush.msrb.mxu1 %v138_v53 }
  0x5b   :  { %378 = vmatpush.msrb.mxu2 %v349_v45  ;;  %436 = vmatpush.msrb.mxu3 %v93_v46 }
  0x5c   :  { %323 = vmatmul.f32.vlgmr.msrb.gmra.mxu1 %v649_v51 }
  0x5d   :  { %379 = vmatpush.msrb.mxu2 %v348_v48  ;;  %437 = vmatpush.msrb.mxu3 %v90_v49 }
  0x5e   :  { %303 = vmatmul.f32.vlgmr.msrb.gmra.mxu3 %v653_v2 }
  0x64   :  { %326 = vmatmul.f32.gmra.mxu1 %v655_v3 }
  0xb2   :  { %v209_v56 = vpop.f32.mrf.mxu0 }
  0xb3   :  { %v232_v57 = vpop.f32.mrf.mxu1  ;;  %v210_v58 = vadd.f32 %v209_v56, %v186_v55 }
  0xb5   :  { %v233_v59 = vadd.f32 %v232_v57, %v210_v58 }
  0xb7   :  { %v330_v60 = vmul.f32 0.5, %v233_v59 }
  0xb9   :  { %447 = vtanh.f32 %v330_v60 }
  0xba   :  { %v212_v50 = vpop.f32.mrf.mxu0 }
  0xbb   :  { %v235_v61 = vpop.f32.mrf.mxu1  ;;  %v213_v62 = vadd.f32 %v212_v50, %v186_v55 }
  0xbd   :  { %v236_v63 = vadd.f32 %v235_v61, %v213_v62 }
  0xbf   :  { %v448_v0 = vpop.eup %447  ;;  %v331_v1 = vmul.f32 0.5, %v236_v63 }
  0xc0   :  { %v334_v2 = vmul.f32 0.5, %v448_v0 }
  0xc1   :  { %449 = vtanh.f32 %v331_v1 }
  0xc2   :  { %v336_v4 = vadd.f32 0.5, %v334_v2 }
  0xc3   :  { %v255_v10 = vpop.f32.mrf.mxu2  ;;  %v278_v12 = vpop.f32.mrf.mxu3 }
  0xc4   :  { %v346_v5 = vmul.f32 %v336_v4, %v649_v51  ;;  %v256_v13 = vadd.f32 %v255_v10, %v187_v11 }
  0xc6   :  { %380 = vmatmul.f32.vlgmr.msrb.gmra.mxu2 %v346_v5  ;;  %v279_v14 = vadd.f32 %v278_v12, %v256_v13 }
  0xc7   :  { %v450_v6 = vpop.eup %449 }
  0xc8   :  { %v335_v7 = vmul.f32 0.5, %v450_v6  ;;  %v338_v16 = vmul.f32 0.5, %v279_v14 }
  0xca   :  { %v337_v8 = vadd.f32 0.5, %v335_v7  ;;  %451 = vtanh.f32 %v338_v16 }
  0xcb   :  { %v258_v15 = vpop.f32.mrf.mxu2  ;;  %v281_v18 = vpop.f32.mrf.mxu3 }
  0xcc   :  { %v347_v9 = vmul.f32 %v337_v8, %v655_v3  ;;  %v259_v17 = vadd.f32 %v258_v15, %v187_v11 }
  0xce   :  { %383 = vmatmul.f32.gmra.mxu2 %v347_v9  ;;  %v282_v19 = vadd.f32 %v281_v18, %v259_v17 }
  0xd0   :  { %v339_v23 = vmul.f32 0.5, %v282_v19  ;;  %v452_v25 = vpop.eup %451 }
  0xd1   :  { %v342_v27 = vmul.f32 0.5, %v452_v25 }
  0xd2   :  { %453 = vtanh.f32 %v339_v23 }
  0xd3   :  { %v344_v32 = vadd.f32 0.5, %v342_v27 }
  0xd5   :  { %v391_v36 = vsub.f32 1.0, %v344_v32 }
  0xd7   :  { %v301_v21 = vpop.f32.mrf.mxu0  ;;  %v393_v41 = vmul.f32 %v391_v36, %v649_v51 }
  0xd8   :  { %v302_v24 = vadd.f32 %v301_v21, %v188_v20  ;;  %v454_v34 = vpop.eup %453 }
  0xd9   :  { %v324_v22 = vpop.f32.mrf.mxu1  ;;  %v343_v37 = vmul.f32 0.5, %v454_v34 }
  0xda   :  { %v325_v26 = vadd.f32 %v324_v22, %v302_v24 }
  0xdb   :  { %v345_v42 = vadd.f32 0.5, %v343_v37 }
  0xdd   :  { %v392_v45 = vsub.f32 1.0, %v345_v42 }
  0xdf   :  { %v394_v47 = vmul.f32 %v392_v45, %v655_v3 }
  0xe1   :  { %v304_v28 = vpop.f32.mrf.mxu3  ;;  %v327_v33 = vpop.f32.mrf.mxu1 }
  0xe2   :  { %v305_v31 = vadd.f32 %v304_v28, %v188_v20 }
  0xe4   :  { %v328_v35 = vadd.f32 %v327_v33, %v305_v31 }
 0x149   :  { %v381_v29 = vpop.f32.mrf.mxu2 }
 0x14a   :  { %v387_v30 = vadd.f32 %v381_v29, %v325_v26 }
 0x14c   :  { %455 = vtanh.f32 %v387_v30 }
 0x151   :  { %v384_v38 = vpop.f32.mrf.mxu2 }
 0x152   :  { %v456_v39 = vpop.eup %455  ;;  %v388_v40 = vadd.f32 %v384_v38, %v328_v35 }
 0x153   :  { %v395_v43 = vmul.f32 %v456_v39, %v344_v32 }
 0x154   :  { %457 = vtanh.f32 %v388_v40 }
 0x155   :  { %v397_v44 = vadd.f32 %v395_v43, %v393_v41 }
 0x157   :  { %399 = vst [vmem:[#allocation10] sm:$0xff] %v397_v44 }
 0x15a   :  { %v458_v46 = vpop.eup %457 }
 0x15b   :  { %v396_v48 = vmul.f32 %v458_v46, %v345_v42 }
 0x15d   :  { %v398_v49 = vadd.f32 %v396_v48, %v394_v47 }
 0x15f   :  { %400 = vst [vmem:[#allocation10 + $0x8] sm:$0xff] %v398_v49 }
 0x160   :  { %413 = dma.vmem_to_hbm [thread:$0]  %s406_s15, 256, %s408_s18, [#allocation4], %s588_s26, %s588_s26, %s589_s27  }
 0x161   :  { %585 = dma.done.wait [#allocation4], 256  }
 0x162   :  { %586 = vsyncadd [#allocation4], 4294967040 }
 0x163   :  { %418 = vsyncpa [#allocation3], 1 }
 0x164   :  { %419 = vsyncpa [#allocation6], 1 }
 0x165   :  { %420 = vsyncpa [#allocation9], 1 }
 0x166   :  { %421 = vsyncpa [#allocation4], 1 }

// kernel: tpu_custom_call.1
= control target key start
LH: loop header
LB: loop body
LE: loop exit
PB: predicated region body
PF: predicated region fallthrough
CT: control target
= control target key end

     0   :  { %10 = vsyncpa [#allocation3], 0  ;;  %s680_s0 = inlined_call_operand.hbm [shape: f32[16,128], index: 0, kind: input, shape index: {}]   ;;  %s681_s1 = inlined_call_operand.hbm [shape: f32[16,128], index: 1, kind: input, shape index: {}]   ;;  %s682_s2 = inlined_call_operand.hbm [shape: f32[256,384], index: 2, kind: input, shape index: {}]   ;;  %s683_s3 = inlined_call_operand.hbm [shape: f32[128,128], index: 3, kind: input, shape index: {}]   ;;  %s684_s4 = inlined_call_operand.vmem [shape: f32[1,384], index: 4, kind: input, shape index: {}]   ;;  %s685_s5 = inlined_call_operand.hbm [shape: f32[16,128], index: 5, kind: output, shape index: {}]  }
   0x1   :  { %11 = vsyncpa [#allocation6], 0 }
   0x2   :  { %12 = vsyncpa [#allocation9], 0 }
   0x3   :  { %13 = vsyncpa [#allocation4], 0  ;;  %s31_s20 = sshll.u32 %s681_s1, 4  ;;  %s587_s21 = smov [#allocation5]   ;;  %s32_s20 = int_to_ptr.hbm [resolvable:$true] %s31_s20 }
   0x4   :  { %s33_s22 = sshll.u32 %s587_s21, 4  ;;  %s18_s25 = sshll.u32 %s680_s0, 4  ;;  %s34_s22 = int_to_ptr.vmem [resolvable:$true] %s33_s22  ;;  %s19_s25 = int_to_ptr.hbm [resolvable:$true] %s18_s25 }
   0x5   :  { %s588_s26 = smov 128   ;;  %s589_s27 = smov 8  }
   0x6   :  { %39 = dma.hbm_to_vmem [thread:$0]  %s32_s20, 256, %s34_s22, [#allocation6], %s588_s26, %s588_s26, %s589_s27  }
   0x7   :  { %s590_s28 = smov [#allocation2]   ;;  %s44_s1 = sshll.u32 %s682_s2, 4  ;;  %s45_s1 = int_to_ptr.hbm [resolvable:$true] %s44_s1 }
   0x8   :  { %s20_s29 = sshll.u32 %s590_s28, 4  ;;  %s591_s0 = smov [#allocation7]   ;;  %s21_s29 = int_to_ptr.vmem [resolvable:$true] %s20_s29 }
   0x9   :  { %26 = dma.hbm_to_vmem [thread:$0]  %s19_s25, 256, %s21_s29, [#allocation3], %s588_s26, %s588_s26, %s589_s27  }
   0xa   :  { %s46_s7 = sshll.u32 %s591_s0, 4  ;;  %s57_s10 = sshll.u32 %s683_s3, 4  ;;  %s47_s7 = int_to_ptr.vmem [resolvable:$true] %s46_s7  ;;  %s58_s10 = int_to_ptr.hbm [resolvable:$true] %s57_s10 }
   0xb   :  { %s592_s11 = smov 384   ;;  %s593_s12 = smov 24  }
   0xc   :  { %52 = dma.hbm_to_vmem [thread:$0]  %s45_s1, 12288, %s47_s7, [#allocation6], %s592_s11, %s592_s11, %s593_s12  }
   0xd   :  { %s594_s13 = smov [#allocation8]  }
   0xe   :  { %s59_s14 = sshll.u32 %s594_s13, 4  ;;  %s60_s14 = int_to_ptr.vmem [resolvable:$true] %s59_s14 }
   0xf   :  { %65 = dma.hbm_to_vmem [thread:$0]  %s58_s10, 2048, %s60_s14, [#allocation9], %s588_s26, %s588_s26, %s589_s27  }
  0x10   :  { %579 = dma.done.wait [#allocation3], 256  }
  0x11   :  { %580 = vsyncadd [#allocation3], 4294967040 }
  0x12   :  { %581 = dma.done.wait [#allocation6], 12544  }
  0x13   :  { %582 = vsyncadd [#allocation6], 4294954752 }
  0x14   :  { %583 = dma.done.wait [#allocation9], 2048  }
  0x15   :  { %584 = vsyncadd [#allocation9], 4294965248  ;;  %v133_v0 = vld [vmem:[#allocation7 + $0x168] sm:$0xff]  ;;  %v130_v1 = vld [vmem:[#allocation7 + $0x150] sm:$0xff]  ;;  %s407_s18 = sshll.u32 %s685_s5, 4  ;;  %s408_s18 = int_to_ptr.hbm [resolvable:$true] %s407_s18 }
  0x16   :  { %v181_v2 = vld [vmem:[#allocation7 + $0x2e8] sm:$0xff]  ;;  %192 = vmatpush.msra.mxu0 %v133_v0  ;;  %v178_v3 = vld [vmem:[#allocation7 + $0x2d0] sm:$0xff]  ;;  %v127_v4 = vld [vmem:[#allocation7 + $0x138] sm:$0xff] }
  0x17   :  { %215 = vmatpush.msra.mxu1 %v181_v2  ;;  %v175_v5 = vld [vmem:[#allocation7 + $0x2b8] sm:$0xff]  ;;  %v124_v6 = vld [vmem:[#allocation7 + $0x120] sm:$0xff]  ;;  %v121_v8 = vld [vmem:[#allocation7 + $0x108] sm:$0xff] }
  0x18   :  { %193 = vmatpush.msra.mxu0 %v130_v1  ;;  %v172_v7 = vld [vmem:[#allocation7 + $0x2a0] sm:$0xff]  ;;  %v169_v9 = vld [vmem:[#allocation7 + $0x288] sm:$0xff]  ;;  %v118_v10 = vld [vmem:[#allocation7 + $0xf0] sm:$0xff] }
  0x19   :  { %216 = vmatpush.msra.mxu1 %v178_v3  ;;  %v166_v11 = vld [vmem:[#allocation7 + $0x270] sm:$0xff]  ;;  %v115_v12 = vld [vmem:[#allocation7 + $0xd8] sm:$0xff]  ;;  %v112_v14 = vld [vmem:[#allocation7 + $0xc0] sm:$0xff] }
  0x1a   :  { %194 = vmatpush.msra.mxu0 %v127_v4  ;;  %v163_v13 = vld [vmem:[#allocation7 + $0x258] sm:$0xff]  ;;  %v160_v15 = vld [vmem:[#allocation7 + $0x240] sm:$0xff]  ;;  %v134_v16 = vld [vmem:[#allocation7 + $0x170] sm:$0xff] }
  0x1b   :  { %217 = vmatpush.msra.mxu1 %v175_v5  ;;  %v131_v17 = vld [vmem:[#allocation7 + $0x158] sm:$0xff]  ;;  %v182_v18 = vld [vmem:[#allocation7 + $0x2f0] sm:$0xff]  ;;  %v109_v20 = vld [vmem:[#allocation7 + $0xa8] sm:$0xff]  ;;  %238 = vmatpush.msra.mxu2 %v134_v16 }
  0x1c   :  { %195 = vmatpush.msra.mxu0 %v124_v6  ;;  %v179_v19 = vld [vmem:[#allocation7 + $0x2d8] sm:$0xff]  ;;  %v157_v21 = vld [vmem:[#allocation7 + $0x228] sm:$0xff]  ;;  %261 = vmatpush.msra.mxu3 %v182_v18  ;;  %v128_v22 = vld [vmem:[#allocation7 + $0x140] sm:$0xff] }
  0x1d   :  { %218 = vmatpush.msra.mxu1 %v172_v7  ;;  %v176_v23 = vld [vmem:[#allocation7 + $0x2c0] sm:$0xff]  ;;  %v106_v24 = vld [vmem:[#allocation7 + $0x90] sm:$0xff]  ;;  %239 = vmatpush.msra.mxu2 %v131_v17  ;;  %v125_v26 = vld [vmem:[#allocation7 + $0x128] sm:$0xff] }
  0x1e   :  { %196 = vmatpush.msra.mxu0 %v121_v8  ;;  %v154_v25 = vld [vmem:[#allocation7 + $0x210] sm:$0xff]  ;;  %262 = vmatpush.msra.mxu3 %v179_v19  ;;  %v173_v27 = vld [vmem:[#allocation7 + $0x2a8] sm:$0xff]  ;;  %v103_v28 = vld [vmem:[#allocation7 + $0x78] sm:$0xff] }
  0x1f   :  { %219 = vmatpush.msra.mxu1 %v169_v9  ;;  %v151_v29 = vld [vmem:[#allocation7 + $0x1f8] sm:$0xff]  ;;  %240 = vmatpush.msra.mxu2 %v128_v22  ;;  %v122_v30 = vld [vmem:[#allocation7 + $0x110] sm:$0xff]  ;;  %v100_v32 = vld [vmem:[#allocation7 + $0x60] sm:$0xff] }
  0x20   :  { %197 = vmatpush.msra.mxu0 %v118_v10  ;;  %263 = vmatpush.msra.mxu3 %v176_v23  ;;  %v170_v31 = vld [vmem:[#allocation7 + $0x290] sm:$0xff]  ;;  %v148_v33 = vld [vmem:[#allocation7 + $0x1e0] sm:$0xff]  ;;  %v119_v34 = vld [vmem:[#allocation7 + $0xf8] sm:$0xff] }
  0x21   :  { %220 = vmatpush.msra.mxu1 %v166_v11  ;;  %241 = vmatpush.msra.mxu2 %v125_v26  ;;  %v167_v35 = vld [vmem:[#allocation7 + $0x278] sm:$0xff]  ;;  %v97_v36 = vld [vmem:[#allocation7 + $0x48] sm:$0xff]  ;;  %v116_v38 = vld [vmem:[#allocation7 + $0xe0] sm:$0xff] }
  0x22   :  { %198 = vmatpush.msra.mxu0 %v115_v12  ;;  %264 = vmatpush.msra.mxu3 %v173_v27  ;;  %v145_v37 = vld [vmem:[#allocation7 + $0x1c8] sm:$0xff]  ;;  %v164_v39 = vld [vmem:[#allocation7 + $0x260] sm:$0xff]  ;;  %v94_v40 = vld [vmem:[#allocation7 + $0x30] sm:$0xff] }
  0x23   :  { %221 = vmatpush.msra.mxu1 %v163_v13  ;;  %242 = vmatpush.msra.mxu2 %v122_v30  ;;  %v142_v41 = vld [vmem:[#allocation7 + $0x1b0] sm:$0xff]  ;;  %v113_v42 = vld [vmem:[#allocation7 + $0xc8] sm:$0xff]  ;;  %v91_v44 = vld [vmem:[#allocation7 + $0x18] sm:$0xff] }
  0x24   :  { %199 = vmatpush.msra.mxu0 %v112_v14  ;;  %265 = vmatpush.msra.mxu3 %v170_v31  ;;  %v161_v43 = vld [vmem:[#allocation7 + $0x248] sm:$0xff]  ;;  %v139_v45 = vld [vmem:[#allocation7 + $0x198] sm:$0xff]  ;;  %v110_v46 = vld [vmem:[#allocation7 + $0xb0] sm:$0xff] }
  0x25   :  { %222 = vmatpush.msra.mxu1 %v160_v15  ;;  %243 = vmatpush.msra.mxu2 %v119_v34  ;;  %v158_v47 = vld [vmem:[#allocation7 + $0x230] sm:$0xff]  ;;  %v88_v48 = vld [vmem:[#allocation7] sm:$0xff]  ;;  %v107_v52 = vld [vmem:[#allocation7 + $0x98] sm:$0xff] }
  0x26   :  { %200 = vmatpush.msra.mxu0 %v109_v20  ;;  %266 = vmatpush.msra.mxu3 %v167_v35  ;;  %v136_v49 = vld [vmem:[#allocation7 + $0x180] sm:$0xff]  ;;  %v647_v50 = vld [vmem:[#allocation5] sm:$0xff]  ;;  %v155_v53 = vld [vmem:[#allocation7 + $0x218] sm:$0xff] }
  0x27   :  { %223 = vmatpush.msra.mxu1 %v157_v21  ;;  %244 = vmatpush.msra.mxu2 %v116_v38  ;;  %v649_v51 = vld [vmem:[#allocation2] sm:$0xff]  ;;  %v135_v54 = vld [vmem:[#allocation7 + $0x178] sm:$0xff]  ;;  %v101_v60 = vld [vmem:[#allocation7 + $0x68] sm:$0xff] }
  0x28   :  { %201 = vmatpush.msra.mxu0 %v106_v24  ;;  %267 = vmatpush.msra.mxu3 %v164_v39  ;;  %v183_v55 = vld [vmem:[#allocation7 + $0x2f8] sm:$0xff]  ;;  %v104_v56 = vld [vmem:[#allocation7 + $0x80] sm:$0xff]  ;;  %v149_v61 = vld [vmem:[#allocation7 + $0x1e8] sm:$0xff] }
  0x29   :  { %224 = vmatpush.msra.mxu1 %v154_v25  ;;  %245 = vmatpush.msra.mxu2 %v113_v42  ;;  %v152_v57 = vld [vmem:[#allocation7 + $0x200] sm:$0xff]  ;;  %v129_v62 = vld [vmem:[#allocation7 + $0x148] sm:$0xff]  ;;  %v98_v0 = vld [vmem:[#allocation7 + $0x50] sm:$0xff] }
  0x2a   :  { %202 = vmatpush.msra.mxu0 %v103_v28  ;;  %268 = vmatpush.msra.mxu3 %v161_v43  ;;  %v132_v58 = vld [vmem:[#allocation7 + $0x160] sm:$0xff]  ;;  %v177_v63 = vld [vmem:[#allocation7 + $0x2c8] sm:$0xff]  ;;  %v146_v1 = vld [vmem:[#allocation7 + $0x1d0] sm:$0xff] }
  0x2b   :  { %225 = vmatpush.msra.mxu1 %v151_v29  ;;  %246 = vmatpush.msra.mxu2 %v110_v46  ;;  %v180_v59 = vld [vmem:[#allocation7 + $0x2e0] sm:$0xff]  ;;  %v653_v2 = vld [vmem:[#allocation5 + $0x8] sm:$0xff]  ;;  %v655_v3 = vld [vmem:[#allocation2 + $0x8] sm:$0xff] }
  0x2c   :  { %203 = vmatpush.msra.mxu0 %v100_v32  ;;  %269 = vmatpush.msra.mxu3 %v158_v47  ;;  %v95_v4 = vld [vmem:[#allocation7 + $0x38] sm:$0xff]  ;;  %v126_v6 = vld [vmem:[#allocation7 + $0x130] sm:$0xff]  ;;  %v92_v8 = vld [vmem:[#allocation7 + $0x20] sm:$0xff] }
  0x2d   :  { %226 = vmatpush.msra.mxu1 %v148_v33  ;;  %247 = vmatpush.msra.mxu2 %v107_v52  ;;  %v143_v5 = vld [vmem:[#allocation7 + $0x1b8] sm:$0xff]  ;;  %v174_v7 = vld [vmem:[#allocation7 + $0x2b0] sm:$0xff]  ;;  %v140_v9 = vld [vmem:[#allocation7 + $0x1a0] sm:$0xff] }
  0x2e   :  { %204 = vmatpush.msra.mxu0 %v97_v36  ;;  %270 = vmatpush.msra.mxu3 %v155_v53  ;;  %v123_v10 = vld [vmem:[#allocation7 + $0x118] sm:$0xff]  ;;  %v89_v11 = vld [vmem:[#allocation7 + $0x8] sm:$0xff]  ;;  %v362_v14 = vld [vmem:[#allocation8 + $0x70] sm:$0xff] }
  0x2f   :  { %227 = vmatpush.msra.mxu1 %v145_v37  ;;  %248 = vmatpush.msra.mxu2 %v104_v56  ;;  %v137_v12 = vld [vmem:[#allocation7 + $0x188] sm:$0xff]  ;;  %v363_v13 = vld [vmem:[#allocation8 + $0x78] sm:$0xff]  ;;  %v360_v16 = vld [vmem:[#allocation8 + $0x60] sm:$0xff] }
  0x30   :  { %205 = vmatpush.msra.mxu0 %v94_v40  ;;  %271 = vmatpush.msra.mxu3 %v152_v57  ;;  %v361_v15 = vld [vmem:[#allocation8 + $0x68] sm:$0xff]  ;;  %v359_v17 = vld [vmem:[#allocation8 + $0x58] sm:$0xff]  ;;  %v358_v18 = vld [vmem:[#allocation8 + $0x50] sm:$0xff] }
  0x31   :  { %228 = vmatpush.msra.mxu1 %v142_v41  ;;  %249 = vmatpush.msra.mxu2 %v101_v60  ;;  %v120_v19 = vld [vmem:[#allocation7 + $0x100] sm:$0xff]  ;;  %v171_v20 = vld [vmem:[#allocation7 + $0x298] sm:$0xff]  ;;  %v357_v21 = vld [vmem:[#allocation8 + $0x48] sm:$0xff] }
  0x32   :  { %206 = vmatpush.msra.mxu0 %v91_v44  ;;  %272 = vmatpush.msra.mxu3 %v149_v61  ;;  %v117_v22 = vld [vmem:[#allocation7 + $0xe8] sm:$0xff]  ;;  %v168_v23 = vld [vmem:[#allocation7 + $0x280] sm:$0xff]  ;;  %v114_v25 = vld [vmem:[#allocation7 + $0xd0] sm:$0xff] }
  0x33   :  { %229 = vmatpush.msra.mxu1 %v139_v45  ;;  %250 = vmatpush.msra.mxu2 %v98_v0  ;;  %v356_v24 = vld [vmem:[#allocation8 + $0x40] sm:$0xff]  ;;  %v165_v26 = vld [vmem:[#allocation7 + $0x268] sm:$0xff]  ;;  %v355_v27 = vld [vmem:[#allocation8 + $0x38] sm:$0xff] }
  0x34   :  { %207 = vmatpush.msra.mxu0 %v88_v48  ;;  %273 = vmatpush.msra.mxu3 %v146_v1  ;;  %v111_v28 = vld [vmem:[#allocation7 + $0xb8] sm:$0xff]  ;;  %v162_v29 = vld [vmem:[#allocation7 + $0x250] sm:$0xff]  ;;  %v108_v31 = vld [vmem:[#allocation7 + $0xa0] sm:$0xff] }
  0x35   :  { %230 = vmatpush.msra.mxu1 %v136_v49  ;;  %208 = vmatmul.f32.vlgmr.msra.gmra.mxu0 %v647_v50  ;;  %v354_v30 = vld [vmem:[#allocation8 + $0x30] sm:$0xff]  ;;  %v159_v32 = vld [vmem:[#allocation7 + $0x238] sm:$0xff]  ;;  %v353_v33 = vld [vmem:[#allocation8 + $0x28] sm:$0xff] }
  0x36   :  { %231 = vmatmul.f32.vlgmr.msra.gmra.mxu1 %v649_v51  ;;  %284 = vmatpush.msrb.mxu0 %v135_v54  ;;  %v105_v34 = vld [vmem:[#allocation7 + $0x88] sm:$0xff]  ;;  %v156_v35 = vld [vmem:[#allocation7 + $0x220] sm:$0xff]  ;;  %v102_v37 = vld [vmem:[#allocation7 + $0x70] sm:$0xff] }
  0x37   :  { %307 = vmatpush.msrb.mxu1 %v183_v55  ;;  %251 = vmatpush.msra.mxu2 %v95_v4  ;;  %v352_v36 = vld [vmem:[#allocation8 + $0x20] sm:$0xff]  ;;  %v153_v38 = vld [vmem:[#allocation7 + $0x208] sm:$0xff]  ;;  %v351_v39 = vld [vmem:[#allocation8 + $0x18] sm:$0xff] }
  0x38   :  { %285 = vmatpush.msrb.mxu0 %v132_v58  ;;  %274 = vmatpush.msra.mxu3 %v143_v5  ;;  %v99_v40 = vld [vmem:[#allocation7 + $0x58] sm:$0xff]  ;;  %v150_v41 = vld [vmem:[#allocation7 + $0x1f0] sm:$0xff]  ;;  %v96_v43 = vld [vmem:[#allocation7 + $0x40] sm:$0xff] }
  0x39   :  { %308 = vmatpush.msrb.mxu1 %v180_v59  ;;  %252 = vmatpush.msra.mxu2 %v92_v8  ;;  %v350_v42 = vld [vmem:[#allocation8 + $0x10] sm:$0xff]  ;;  %v147_v44 = vld [vmem:[#allocation7 + $0x1d8] sm:$0xff]  ;;  %v349_v45 = vld [vmem:[#allocation8 + $0x8] sm:$0xff] }
  0x3a   :  { %286 = vmatpush.msrb.mxu0 %v129_v62  ;;  %275 = vmatpush.msra.mxu3 %v140_v9  ;;  %v93_v46 = vld [vmem:[#allocation7 + $0x28] sm:$0xff]  ;;  %v144_v47 = vld [vmem:[#allocation7 + $0x1c0] sm:$0xff]  ;;  %v90_v49 = vld [vmem:[#allocation7 + $0x10] sm:$0xff] }
  0x3b   :  { %309 = vmatpush.msrb.mxu1 %v177_v63  ;;  %253 = vmatpush.msra.mxu2 %v89_v11  ;;  %v348_v48 = vld [vmem:[#allocation8] sm:$0xff]  ;;  %v141_v52 = vld [vmem:[#allocation7 + $0x1a8] sm:$0xff]  ;;  %v138_v53 = vld [vmem:[#allocation7 + $0x190] sm:$0xff] }
  0x3c   :  { %287 = vmatpush.msrb.mxu0 %v126_v6  ;;  %276 = vmatpush.msra.mxu3 %v137_v12 }
  0x3d   :  { %211 = vmatmul.f32.gmra.mxu0 %v653_v2  ;;  %310 = vmatpush.msrb.mxu1 %v174_v7 }
  0x3e   :  { %234 = vmatmul.f32.gmra.mxu1 %v655_v3  ;;  %288 = vmatpush.msrb.mxu0 %v123_v10 }
  0x3f   :  { %364 = vmatpush.msrb.mxu2 %v363_v13  ;;  %422 = vmatpush.msrb.mxu3 %v135_v54  ;;  %v184_v54 = vld [vmem:[%s684_s4] sm:$0x7]  ;;  %s595_s4 = smov [#allocation10]  }
  0x40   :  { %254 = vmatmul.f32.vlgmr.msra.gmra.mxu2 %v647_v50  ;;  %277 = vmatmul.f32.vlgmr.msra.gmra.mxu3 %v649_v51  ;;  %v186_v55 = vperm.slane %v184_v54, 0  ;;  %v187_v11 = vperm.slane %v184_v54, 1  ;;  %s405_s15 = sshll.u32 %s595_s4, 4  ;;  %s406_s15 = int_to_ptr.vmem [resolvable:$true] %s405_s15 }
  0x41   :  { %365 = vmatpush.msrb.mxu2 %v362_v14  ;;  %423 = vmatpush.msrb.mxu3 %v132_v58 }
  0x42   :  { %289 = vmatpush.msrb.mxu0 %v120_v19  ;;  %311 = vmatpush.msrb.mxu1 %v171_v20  ;;  %v188_v20 = vperm.slane %v184_v54, 2 }
  0x43   :  { %366 = vmatpush.msrb.mxu2 %v361_v15  ;;  %424 = vmatpush.msrb.mxu3 %v129_v62 }
  0x44   :  { %290 = vmatpush.msrb.mxu0 %v117_v22  ;;  %312 = vmatpush.msrb.mxu1 %v168_v23 }
  0x45   :  { %367 = vmatpush.msrb.mxu2 %v360_v16  ;;  %425 = vmatpush.msrb.mxu3 %v126_v6 }
  0x46   :  { %291 = vmatpush.msrb.mxu0 %v114_v25  ;;  %313 = vmatpush.msrb.mxu1 %v165_v26 }
  0x47   :  { %368 = vmatpush.msrb.mxu2 %v359_v17  ;;  %426 = vmatpush.msrb.mxu3 %v123_v10 }
  0x48   :  { %257 = vmatmul.f32.gmra.mxu2 %v653_v2  ;;  %280 = vmatmul.f32.gmra.mxu3 %v655_v3 }
  0x49   :  { %369 = vmatpush.msrb.mxu2 %v358_v18  ;;  %427 = vmatpush.msrb.mxu3 %v120_v19 }
  0x4a   :  { %292 = vmatpush.msrb.mxu0 %v111_v28  ;;  %314 = vmatpush.msrb.mxu1 %v162_v29 }
  0x4b   :  { %370 = vmatpush.msrb.mxu2 %v357_v21  ;;  %428 = vmatpush.msrb.mxu3 %v117_v22 }
  0x4c   :  { %293 = vmatpush.msrb.mxu0 %v108_v31  ;;  %315 = vmatpush.msrb.mxu1 %v159_v32 }
  0x4d   :  { %371 = vmatpush.msrb.mxu2 %v356_v24  ;;  %429 = vmatpush.msrb.mxu3 %v114_v25 }
  0x4e   :  { %294 = vmatpush.msrb.mxu0 %v105_v34  ;;  %316 = vmatpush.msrb.mxu1 %v156_v35 }
  0x4f   :  { %372 = vmatpush.msrb.mxu2 %v355_v27  ;;  %430 = vmatpush.msrb.mxu3 %v111_v28 }
  0x50   :  { %295 = vmatpush.msrb.mxu0 %v102_v37  ;;  %317 = vmatpush.msrb.mxu1 %v153_v38 }
  0x51   :  { %373 = vmatpush.msrb.mxu2 %v354_v30  ;;  %431 = vmatpush.msrb.mxu3 %v108_v31 }
  0x52   :  { %296 = vmatpush.msrb.mxu0 %v99_v40  ;;  %318 = vmatpush.msrb.mxu1 %v150_v41 }
  0x53   :  { %374 = vmatpush.msrb.mxu2 %v353_v33  ;;  %432 = vmatpush.msrb.mxu3 %v105_v34 }
  0x54   :  { %297 = vmatpush.msrb.mxu0 %v96_v43  ;;  %319 = vmatpush.msrb.mxu1 %v147_v44 }
  0x55   :  { %375 = vmatpush.msrb.mxu2 %v352_v36  ;;  %433 = vmatpush.msrb.mxu3 %v102_v37 }
  0x56   :  { %298 = vmatpush.msrb.mxu0 %v93_v46  ;;  %320 = vmatpush.msrb.mxu1 %v144_v47 }
  0x57   :  { %376 = vmatpush.msrb.mxu2 %v351_v39  ;;  %434 = vmatpush.msrb.mxu3 %v99_v40 }
  0x58   :  { %299 = vmatpush.msrb.mxu0 %v90_v49  ;;  %321 = vmatpush.msrb.mxu1 %v141_v52 }
  0x59   :  { %377 = vmatpush.msrb.mxu2 %v350_v42  ;;  %435 = vmatpush.msrb.mxu3 %v96_v43 }
  0x5a   :  { %300 = vmatmul.f32.vlgmr.msrb.gmra.mxu0 %v647_v50  ;;  %322 = vmatpush.msrb.mxu1 %v138_v53 }
  0x5b   :  { %378 = vmatpush.msrb.mxu2 %v349_v45  ;;  %436 = vmatpush.msrb.mxu3 %v93_v46 }
  0x5c   :  { %323 = vmatmul.f32.vlgmr.msrb.gmra.mxu1 %v649_v51 }
  0x5d   :  { %379 = vmatpush.msrb.mxu2 %v348_v48  ;;  %437 = vmatpush.msrb.mxu3 %v90_v49 }
  0x5e   :  { %303 = vmatmul.f32.vlgmr.msrb.gmra.mxu3 %v653_v2 }
  0x64   :  { %326 = vmatmul.f32.gmra.mxu1 %v655_v3 }
  0xb2   :  { %v209_v56 = vpop.f32.mrf.mxu0 }
  0xb3   :  { %v232_v57 = vpop.f32.mrf.mxu1  ;;  %v210_v58 = vadd.f32 %v209_v56, %v186_v55 }
  0xb5   :  { %v233_v59 = vadd.f32 %v232_v57, %v210_v58 }
  0xb7   :  { %v330_v60 = vmul.f32 0.5, %v233_v59 }
  0xb9   :  { %447 = vtanh.f32 %v330_v60 }
  0xba   :  { %v212_v50 = vpop.f32.mrf.mxu0 }
  0xbb   :  { %v235_v61 = vpop.f32.mrf.mxu1  ;;  %v213_v62 = vadd.f32 %v212_v50, %v186_v55 }
  0xbd   :  { %v236_v63 = vadd.f32 %v235_v61, %v213_v62 }
  0xbf   :  { %v448_v0 = vpop.eup %447  ;;  %v331_v1 = vmul.f32 0.5, %v236_v63 }
  0xc0   :  { %v334_v2 = vmul.f32 0.5, %v448_v0 }
  0xc1   :  { %449 = vtanh.f32 %v331_v1 }
  0xc2   :  { %v336_v4 = vadd.f32 0.5, %v334_v2 }
  0xc3   :  { %v255_v10 = vpop.f32.mrf.mxu2  ;;  %v278_v12 = vpop.f32.mrf.mxu3 }
  0xc4   :  { %v346_v5 = vmul.f32 %v336_v4, %v649_v51  ;;  %v256_v13 = vadd.f32 %v255_v10, %v187_v11 }
  0xc6   :  { %380 = vmatmul.f32.vlgmr.msrb.gmra.mxu2 %v346_v5  ;;  %v279_v14 = vadd.f32 %v278_v12, %v256_v13 }
  0xc7   :  { %v450_v6 = vpop.eup %449 }
  0xc8   :  { %v335_v7 = vmul.f32 0.5, %v450_v6  ;;  %v338_v16 = vmul.f32 0.5, %v279_v14 }
  0xca   :  { %v337_v8 = vadd.f32 0.5, %v335_v7  ;;  %451 = vtanh.f32 %v338_v16 }
  0xcb   :  { %v258_v15 = vpop.f32.mrf.mxu2  ;;  %v281_v18 = vpop.f32.mrf.mxu3 }
  0xcc   :  { %v347_v9 = vmul.f32 %v337_v8, %v655_v3  ;;  %v259_v17 = vadd.f32 %v258_v15, %v187_v11 }
  0xce   :  { %383 = vmatmul.f32.gmra.mxu2 %v347_v9  ;;  %v282_v19 = vadd.f32 %v281_v18, %v259_v17 }
  0xd0   :  { %v339_v23 = vmul.f32 0.5, %v282_v19  ;;  %v452_v25 = vpop.eup %451 }
  0xd1   :  { %v342_v27 = vmul.f32 0.5, %v452_v25 }
  0xd2   :  { %453 = vtanh.f32 %v339_v23 }
  0xd3   :  { %v344_v32 = vadd.f32 0.5, %v342_v27 }
  0xd5   :  { %v391_v36 = vsub.f32 1.0, %v344_v32 }
  0xd7   :  { %v301_v21 = vpop.f32.mrf.mxu0  ;;  %v393_v41 = vmul.f32 %v391_v36, %v649_v51 }
  0xd8   :  { %v302_v24 = vadd.f32 %v301_v21, %v188_v20  ;;  %v454_v34 = vpop.eup %453 }
  0xd9   :  { %v324_v22 = vpop.f32.mrf.mxu1  ;;  %v343_v37 = vmul.f32 0.5, %v454_v34 }
  0xda   :  { %v325_v26 = vadd.f32 %v324_v22, %v302_v24 }
  0xdb   :  { %v345_v42 = vadd.f32 0.5, %v343_v37 }
  0xdd   :  { %v392_v45 = vsub.f32 1.0, %v345_v42 }
  0xdf   :  { %v394_v47 = vmul.f32 %v392_v45, %v655_v3 }
  0xe1   :  { %v304_v28 = vpop.f32.mrf.mxu3  ;;  %v327_v33 = vpop.f32.mrf.mxu1 }
  0xe2   :  { %v305_v31 = vadd.f32 %v304_v28, %v188_v20 }
  0xe4   :  { %v328_v35 = vadd.f32 %v327_v33, %v305_v31 }
 0x149   :  { %v381_v29 = vpop.f32.mrf.mxu2 }
 0x14a   :  { %v387_v30 = vadd.f32 %v381_v29, %v325_v26 }
 0x14c   :  { %455 = vtanh.f32 %v387_v30 }
 0x151   :  { %v384_v38 = vpop.f32.mrf.mxu2 }
 0x152   :  { %v456_v39 = vpop.eup %455  ;;  %v388_v40 = vadd.f32 %v384_v38, %v328_v35 }
 0x153   :  { %v395_v43 = vmul.f32 %v456_v39, %v344_v32 }
 0x154   :  { %457 = vtanh.f32 %v388_v40 }
 0x155   :  { %v397_v44 = vadd.f32 %v395_v43, %v393_v41 }
 0x157   :  { %399 = vst [vmem:[#allocation10] sm:$0xff] %v397_v44 }
 0x15a   :  { %v458_v46 = vpop.eup %457 }
 0x15b   :  { %v396_v48 = vmul.f32 %v458_v46, %v345_v42 }
 0x15d   :  { %v398_v49 = vadd.f32 %v396_v48, %v394_v47 }
 0x15f   :  { %400 = vst [vmem:[#allocation10 + $0x8] sm:$0xff] %v398_v49 }
 0x160   :  { %413 = dma.vmem_to_hbm [thread:$0]  %s406_s15, 256, %s408_s18, [#allocation4], %s588_s26, %s588_s26, %s589_s27  }
 0x161   :  { %585 = dma.done.wait [#allocation4], 256  }
 0x162   :  { %586 = vsyncadd [#allocation4], 4294967040 }
 0x163   :  { %418 = vsyncpa [#allocation3], 1 }
 0x164   :  { %419 = vsyncpa [#allocation6], 1 }
 0x165   :  { %420 = vsyncpa [#allocation9], 1 }
 0x166   :  { %421 = vsyncpa [#allocation4], 1 }

</bundles_post_ra>
